<compile_context>
chip_gen: v6e
topology: v6e:2x2x1
jax: 0.10.0
libtpu: 0.0.40
codegen_flags: <defaults>
</compile_context>

<pallas_src>
import math
import functools

import jax
import jax.numpy as jnp
from jax import lax
from jax.experimental import pallas as pl
from jax.experimental.pallas import tpu as pltpu


# ---------------------------------------------------------------------------
# Tile selection helpers (hardened: never silently emit a huge full-dim block)
# ---------------------------------------------------------------------------
def _linear_tile(dim, candidates):
    """Return (tile, padded_dim). Candidates are largest-first."""
    for c in candidates:
        if dim % c == 0:
            return c, dim
    if dim <= candidates[0]:
        return dim, dim                              # single full block (legal + small)
    t = candidates[-1]
    return t, ((dim + t - 1) // t) * t               # pad up to smallest candidate


def _flash_tiles(S):
    """Return (tq, tk, padded_S) for the attention grid."""
    if S <= 512:
        return S, S, S                               # single block per axis
    for tq in (512, 256, 128):
        if S % tq == 0:
            return tq, min(tq, 256), S
    # TODO(synk): ragged S handled by zero padding; a cdiv-grid + masking variant
    #             would avoid the padded-row waste.
    s_pad = ((S + 511) // 512) * 512
    return 512, 256, s_pad


# ---------------------------------------------------------------------------
# Tiled linear (matmul [+ bias]) kernels — used for c_attn and c_proj
#   grid = (M//tm, N//tn, K//tk), bf16 operands, f32 VMEM accumulator,
#   bias added on the last K step.
# ---------------------------------------------------------------------------
def _linear_bias_kernel(x_ref, w_ref, b_ref, o_ref, acc_ref):
    k = pl.program_id(2)

    @pl.when(k == 0)
    def _():
        acc_ref[...] = jnp.zeros_like(acc_ref)

    acc_ref[...] += jnp.dot(x_ref[...], w_ref[...],
                            preferred_element_type=jnp.float32)

    @pl.when(k == pl.num_programs(2) - 1)
    def _():
        o_ref[...] = (acc_ref[...] + b_ref[...].astype(jnp.float32)).astype(o_ref.dtype)


def _linear_nobias_kernel(x_ref, w_ref, o_ref, acc_ref):
    k = pl.program_id(2)

    @pl.when(k == 0)
    def _():
        acc_ref[...] = jnp.zeros_like(acc_ref)

    acc_ref[...] += jnp.dot(x_ref[...], w_ref[...],
                            preferred_element_type=jnp.float32)

    @pl.when(k == pl.num_programs(2) - 1)
    def _():
        o_ref[...] = acc_ref[...].astype(o_ref.dtype)


def linear(x2d, w, b=None, *, out_dtype=None):
    """x2d: (M, K), w: (K, N), b: (N,) or None -> (M, N) in out_dtype."""
    M, K = x2d.shape
    _, N = w.shape
    out_dtype = x2d.dtype if out_dtype is None else out_dtype

    tm, Mp = _linear_tile(M, (512, 256, 128))
    tn, Np = _linear_tile(N, (512, 256, 128))
    tk, Kp = _linear_tile(K, (1024, 512, 256, 128))

    if (Mp, Kp) != (M, K):
        x2d = jnp.pad(x2d, ((0, Mp - M), (0, Kp - K)))
    if (Kp, Np) != (K, N):
        w = jnp.pad(w, ((0, Kp - K), (0, Np - N)))
    if b is not None and Np != N:
        b = jnp.pad(b, (0, Np - N))

    grid = (Mp // tm, Np // tn, Kp // tk)
    x_spec = pl.BlockSpec((tm, tk), lambda i, j, k: (i, k))
    w_spec = pl.BlockSpec((tk, tn), lambda i, j, k: (k, j))
    o_spec = pl.BlockSpec((tm, tn), lambda i, j, k: (i, j))
    scratch = [pltpu.VMEM((tm, tn), jnp.float32)]
    cparams = pltpu.CompilerParams(
        dimension_semantics=("parallel", "parallel", "arbitrary"))

    if b is None:
        out = pl.pallas_call(
            _linear_nobias_kernel,
            out_shape=jax.ShapeDtypeStruct((Mp, Np), out_dtype),
            grid=grid,
            in_specs=[x_spec, w_spec],
            out_specs=o_spec,
            scratch_shapes=scratch,
            compiler_params=cparams,
        )(x2d, w)
    else:
        b2d = b.astype(jnp.float32).reshape(1, Np)
        b_spec = pl.BlockSpec((1, tn), lambda i, j, k: (0, j))
        out = pl.pallas_call(
            _linear_bias_kernel,
            out_shape=jax.ShapeDtypeStruct((Mp, Np), out_dtype),
            grid=grid,
            in_specs=[x_spec, w_spec, b_spec],
            out_specs=o_spec,
            scratch_shapes=scratch,
            compiler_params=cparams,
        )(x2d, w, b2d)

    if (Mp, Np) != (M, N):
        out = out[:M, :N]
    return out


# ---------------------------------------------------------------------------
# Flash-style causal attention kernel
#   grid = (B, head_blocks, T) where T enumerates only causally-active (qi, ki)
#   pairs (triangular grid via scalar-prefetched index maps).
# ---------------------------------------------------------------------------
def _flash_attn_kernel(qi_map_ref, ki_map_ref, q_ref, k_ref, v_ref, o_ref,
                       qs_sc, m_sc, l_sc, acc_sc, *,
                       tq, tk, hb, D, scale, seq_length, mask_value):
    t = pl.program_id(2)
    qi = qi_map_ref[t]
    ki = ki_map_ref[t]
    q_start = qi * tq
    k_start = ki * tk

    # --- first KV block of this q block: init stats + pre-scale q once -------
    @pl.when(ki == 0)
    def _():
        m_sc[...] = jnp.full_like(m_sc, -jnp.inf)
        l_sc[...] = jnp.zeros_like(l_sc)
        acc_sc[...] = jnp.zeros_like(acc_sc)
        # logn attention scaling and 1/sqrt(D) folded into q, computed once per
        # q block (hoisted out of the KV loop).
        row = lax.broadcasted_iota(jnp.int32, (tq, 1), 0) + q_start
        pos = (row + 1).astype(jnp.float32)
        logn = jnp.where(pos > seq_length,
                         jnp.log(pos) * (1.0 / math.log(seq_length)),
                         1.0)
        qs_sc[...] = (q_ref[...].astype(jnp.float32) * (scale * logn)).astype(qs_sc.dtype)

    def process(apply_mask):
        if apply_mask:
            row = q_start + lax.broadcasted_iota(jnp.int32, (tq, tk), 0)
            col = k_start + lax.broadcasted_iota(jnp.int32, (tq, tk), 1)
            keep = col <= row
        for h in range(hb):                      # hb == 1 whenever head_dim >= 128
            lo, hi = h * D, (h + 1) * D
            qh = qs_sc[:, lo:hi]                 # (tq, D) bf16 (pre-scaled)
            kh = k_ref[:, lo:hi]                 # (tk, D) bf16
            vh = v_ref[:, lo:hi]                 # (tk, D) bf16
            s = lax.dot_general(qh, kh,
                                dimension_numbers=(((1,), (1,)), ((), ())),
                                preferred_element_type=jnp.float32)   # (tq, tk)
            if apply_mask:
                s = jnp.where(keep, s, mask_value)
            m_prev = m_sc[h]
            m_new = jnp.maximum(m_prev, jnp.max(s, axis=-1, keepdims=True))
            alpha = jnp.exp(m_prev - m_new)
            p = jnp.exp(s - m_new)                                    # (tq, tk) f32
            l_sc[h] = alpha * l_sc[h] + jnp.sum(p, axis=-1, keepdims=True)
            acc_sc[h] = alpha * acc_sc[h] + jnp.dot(
                p.astype(vh.dtype), vh, preferred_element_type=jnp.float32)
            m_sc[h] = m_new

    # Causal mask only on diagonal-straddling KV blocks; interior (fully
    # below-diagonal) blocks skip the iota/compare/select VPU work entirely.
    need_mask = (k_start + tk - 1) > q_start

    @pl.when(need_mask)
    def _():
        process(True)

    @pl.when(jnp.logical_not(need_mask))
    def _():
        process(False)

    # --- last causally-active KV block: normalize (exact divide) & write -----
    @pl.when(ki == (q_start + tq - 1) // tk)
    def _():
        for h in range(hb):
            lo, hi = h * D, (h + 1) * D
            o_ref[:, lo:hi] = (acc_sc[h] / l_sc[h]).astype(o_ref.dtype)


def flash_causal_attention(mixed3, *, B, S, E, H, D, seq_length, out_dtype):
    """mixed3: (B, S, 3E) c_attn output, last axis = [q(H,D) | k(H,D) | v(H,D)].

    Returns the merged-head attention context in (B, S, E) layout, ready for
    c_proj (no split-heads / merge-heads transposes anywhere).
    """
    tq, tk, S_pad = _flash_tiles(S)
    if S_pad != S:
        mixed3 = jnp.pad(mixed3, ((0, 0), (0, S_pad - S), (0, 0)))
    nq = S_pad // tq

    # Heads per lane block: keep the 128-lane axis dense.
    if D % 128 == 0:
        hb = 1
    elif D <= 128 and 128 % D == 0:
        hb = min(H, 128 // D)
        while H % hb:
            hb -= 1
    else:
        hb = 1
    HB = hb * D

    if HB % 128 == 0:
        # Main path: read q/k/v straight out of mixed3, head block selected by
        # the lane-axis block index.
        n_hblk = H // hb
        q_src = k_src = v_src = mixed3
        q_off, k_off, v_off = 0, n_hblk, 2 * n_hblk
    else:
        # Small-head-dim fallback (e.g. the unit test, D=8): full-width lane
        # blocks over sliced q/k/v keep the BlockSpec (8,128)-legal.
        # TODO(synk): these three slices cost one extra (bf16) HBM pass.
        hb, HB, n_hblk = H, E, 1
        q_src = mixed3[:, :, 0 * E:1 * E]
        k_src = mixed3[:, :, 1 * E:2 * E]
        v_src = mixed3[:, :, 2 * E:3 * E]
        q_off = k_off = v_off = 0

    # Triangular (qi, ki) enumeration: only causally-active KV blocks visited.
    qi_l, ki_l = [], []
    for qi in range(nq):
        last = (qi * tq + tq - 1) // tk
        for ki in range(last + 1):
            qi_l.append(qi)
            ki_l.append(ki)
    qi_map = jnp.asarray(qi_l, dtype=jnp.int32)
    ki_map = jnp.asarray(ki_l, dtype=jnp.int32)
    T = len(qi_l)

    kernel = functools.partial(
        _flash_attn_kernel,
        tq=tq, tk=tk, hb=hb, D=D,
        scale=1.0 / math.sqrt(D),
        seq_length=float(seq_length),
        mask_value=float(jnp.finfo(jnp.float32).min))

    grid_spec = pltpu.PrefetchScalarGridSpec(
        num_scalar_prefetch=2,
        grid=(B, n_hblk, T),
        in_specs=[
            pl.BlockSpec((None, tq, HB),
                         lambda b, h, t, qi_m, ki_m: (b, qi_m[t], q_off + h)),
            pl.BlockSpec((None, tk, HB),
                         lambda b, h, t, qi_m, ki_m: (b, ki_m[t], k_off + h)),
            pl.BlockSpec((None, tk, HB),
                         lambda b, h, t, qi_m, ki_m: (b, ki_m[t], v_off + h)),
        ],
        out_specs=pl.BlockSpec((None, tq, HB),
                               lambda b, h, t, qi_m, ki_m: (b, qi_m[t], h)),
        scratch_shapes=[
            pltpu.VMEM((tq, HB), mixed3.dtype),      # pre-scaled q
            pltpu.VMEM((hb, tq, 1), jnp.float32),    # running max
            pltpu.VMEM((hb, tq, 1), jnp.float32),    # running sum
            pltpu.VMEM((hb, tq, D), jnp.float32),    # output accumulator
        ])

    out = pl.pallas_call(
        kernel,
        out_shape=jax.ShapeDtypeStruct((B, S_pad, E), out_dtype),
        grid_spec=grid_spec,
        compiler_params=pltpu.CompilerParams(
            dimension_semantics=("parallel", "parallel", "arbitrary")),
    )(qi_map, ki_map, q_src, k_src, v_src)

    if S_pad != S:
        out = out[:, :S, :]
    return out


# ---------------------------------------------------------------------------
# QWenAttention forward (glue in JAX, hot paths in Pallas)
# ---------------------------------------------------------------------------
def qwen_attention_forward(hidden_states, w_attn, b_attn, w_proj, *,
                           num_heads, seq_length):
    """Eval-mode QWenAttention forward (no layer_past / use_cache / dropout)."""
    B, S, E = hidden_states.shape
    H = num_heads
    D = E // H
    cdtype = jnp.bfloat16

    x2d = hidden_states.reshape(B * S, E).astype(cdtype)
    w_attn = w_attn.astype(cdtype)
    w_proj = w_proj.astype(cdtype)

    # c_attn: bf16 matmul, f32 accumulate, bf16 out (feeds attention directly).
    mixed = linear(x2d, w_attn, b_attn, out_dtype=cdtype)
    mixed3 = mixed.reshape(B, S, 3 * E)

    # Causal flash attention; logn + 1/sqrt(D) + causal mask handled in-kernel.
    ctx = flash_causal_attention(mixed3, B=B, S=S, E=E, H=H, D=D,
                                 seq_length=seq_length, out_dtype=cdtype)

    # c_proj (config.no_bias=True -> bias-free), cast back to input dtype.
    out = linear(ctx.reshape(B * S, E), w_proj, None,
                 out_dtype=hidden_states.dtype)
    return out.reshape(B, S, E)


# ---------------------------------------------------------------------------
# Pure-JAX reference (f32) for correctness checking
# ---------------------------------------------------------------------------
def reference_forward(hidden, w_attn, b_attn, w_proj, *, num_heads, seq_length):
    B, S, E = hidden.shape
    D = E // num_heads
    mixed = hidden.reshape(B * S, E) @ w_attn + b_attn
    mixed = mixed.reshape(B, S, 3, num_heads, D)
    q = mixed[:, :, 0].transpose(0, 2, 1, 3)
    k = mixed[:, :, 1].transpose(0, 2, 1, 3)
    v = mixed[:, :, 2].transpose(0, 2, 1, 3)
    pos = jnp.arange(1, S + 1, dtype=jnp.float32)
    logn = jnp.where(pos > seq_length, jnp.log(pos) / math.log(seq_length), 1.0)
    q = q * logn[None, None, :, None]
    s = jnp.einsum("bhqd,bhkd->bhqk", q, k) / math.sqrt(D)
    mask = jnp.tril(jnp.ones((S, S), dtype=bool))
    s = jnp.where(mask, s, jnp.finfo(jnp.float32).min)
    p = jax.nn.softmax(s, axis=-1)
    ctx = jnp.einsum("bhqk,bhkd->bhqd", p, v)
    ctx = ctx.transpose(0, 2, 1, 3).reshape(B * S, E)
    return (ctx @ w_proj).reshape(B, S, E)


if __name__ == "__main__":
    import numpy as np

    def run_case(B, S, E, H, seq_length, key):
        k_x, k_wa, k_ba, k_wp = jax.random.split(key, 4)
        hidden = jax.random.normal(k_x, (B, S, E), dtype=jnp.float32)
        w_attn = jax.random.normal(k_wa, (E, 3 * E), dtype=jnp.float32) * 0.02
        b_attn = jax.random.normal(k_ba, (3 * E,), dtype=jnp.float32) * 0.02
        w_proj = jax.random.normal(k_wp, (E, E), dtype=jnp.float32) * 0.02
        out = qwen_attention_forward(hidden, w_attn, b_attn, w_proj,
                                     num_heads=H, seq_length=seq_length)
        jax.block_until_ready(out)
        assert out.shape == (B, S, E)
        ref = reference_forward(hidden, w_attn, b_attn, w_proj,
                                num_heads=H, seq_length=seq_length)
        np.testing.assert_allclose(np.asarray(out), np.asarray(ref),
                                   rtol=0.1, atol=0.02)

    key = jax.random.PRNGKey(0)
    k1, k2 = jax.random.split(key)
    # Small config consistent with the module (head-packed lane path, D=8):
    run_case(B=2, S=8, E=32, H=4, seq_length=8, key=k1)
    # Direct-from-mixed lane path (D=128) + logn scaling active (S > seq_length):
    run_case(B=1, S=16, E=128, H=1, seq_length=8, key=k2)
    print("KERNEL_OK")
</pallas_src>

<mosaic_0001>
module attributes {stable_mosaic.version = 11 : i64} {
  func.func @_linear_bias_kernel(%arg0: i32, %arg1: i32, %arg2: i32, %arg3: memref<16x32xbf16, #tpu.memory_space<vmem>>, %arg4: memref<32x96xbf16, #tpu.memory_space<vmem>>, %arg5: memref<1x96xf32, #tpu.memory_space<vmem>>, %arg6: memref<16x96xbf16, #tpu.memory_space<vmem>>, %arg7: memref<16x96xf32, #tpu.memory_space<vmem>>) attributes {dimension_semantics = [#tpu.dimension_semantics<parallel>, #tpu.dimension_semantics<parallel>, #tpu.dimension_semantics<arbitrary>], iteration_bounds = array<i64: 1, 1, 1>, scalar_prefetch = 0 : i64, scratch_operands = 1 : i64, tpu.core_type = #tpu.core_type<tc>, window_params = [{transform_indices = @transform_0, window_bounds = array<i64: 16, 32>}, {transform_indices = @transform_1, window_bounds = array<i64: 32, 96>}, {transform_indices = @transform_2, window_bounds = array<i64: 1, 96>}, {transform_indices = @transform_3, window_bounds = array<i64: 16, 96>}]} {
    %c0_i32 = arith.constant 0 : i32
    %0 = arith.cmpi eq, %arg2, %c0_i32 : i32
    %1 = arith.extui %0 : i1 to i32
    %c0_i32_0 = arith.constant 0 : i32
    %2 = arith.cmpi ne, %1, %c0_i32_0 : i32
    scf.if %2 {
      %cst_10 = arith.constant 0.000000e+00 : f32
      %12 = vector.broadcast %cst_10 : f32 to vector<16x96xf32>
      %c0_11 = arith.constant 0 : index
      %c0_12 = arith.constant 0 : index
      %13 = vector.load %arg7[%c0_11, %c0_12] : memref<16x96xf32, #tpu.memory_space<vmem>>, vector<16x96xf32>
      tpu.vector_store %arg7[%c0_11, %c0_12], %12 {strides = array<i32>} : memref<16x96xf32, #tpu.memory_space<vmem>>, vector<16x96xf32>,
    } else {
    }
    %c0 = arith.constant 0 : index
    %c0_1 = arith.constant 0 : index
    %3 = vector.load %arg7[%c0, %c0_1] : memref<16x96xf32, #tpu.memory_space<vmem>>, vector<16x96xf32>
    %c0_2 = arith.constant 0 : index
    %c0_3 = arith.constant 0 : index
    %4 = vector.load %arg3[%c0_2, %c0_3] : memref<16x32xbf16, #tpu.memory_space<vmem>>, vector<16x32xbf16>
    %c0_4 = arith.constant 0 : index
    %c0_5 = arith.constant 0 : index
    %5 = vector.load %arg4[%c0_4, %c0_5] : memref<32x96xbf16, #tpu.memory_space<vmem>>, vector<32x96xbf16>
    %cst = arith.constant dense<0.000000e+00> : vector<16x96xf32>
    %6 = tpu.matmul %4, %5, %cst {dimension_numbers = #tpu.dot_dimension_numbers<[1], [0], [0], [1], [0, 0, 1, 1], [], []>} : vector<16x32xbf16>, vector<32x96xbf16>, vector<16x96xf32> -> vector<16x96xf32>
    %7 = arith.addf %3, %6 : vector<16x96xf32>
    %c0_6 = arith.constant 0 : index
    %c0_7 = arith.constant 0 : index
    %8 = vector.load %arg7[%c0_6, %c0_7] : memref<16x96xf32, #tpu.memory_space<vmem>>, vector<16x96xf32>
    tpu.vector_store %arg7[%c0_6, %c0_7], %7 {strides = array<i32>} : memref<16x96xf32, #tpu.memory_space<vmem>>, vector<16x96xf32>,
    %c0_i32_8 = arith.constant 0 : i32
    %9 = arith.cmpi eq, %arg2, %c0_i32_8 : i32
    %10 = arith.extui %9 : i1 to i32
    %c0_i32_9 = arith.constant 0 : i32
    %11 = arith.cmpi ne, %10, %c0_i32_9 : i32
    scf.if %11 {
      %c0_10 = arith.constant 0 : index
      %c0_11 = arith.constant 0 : index
      %12 = vector.load %arg7[%c0_10, %c0_11] : memref<16x96xf32, #tpu.memory_space<vmem>>, vector<16x96xf32>
      %c0_12 = arith.constant 0 : index
      %c0_13 = arith.constant 0 : index
      %13 = vector.load %arg5[%c0_12, %c0_13] : memref<1x96xf32, #tpu.memory_space<vmem>>, vector<1x96xf32>
      %14 = vector.broadcast %13 : vector<1x96xf32> to vector<16x96xf32>
      %15 = arith.addf %12, %14 : vector<16x96xf32>
      %16 = arith.truncf %15 : vector<16x96xf32> to vector<16x96xbf16>
      %c0_14 = arith.constant 0 : index
      %c0_15 = arith.constant 0 : index
      %17 = vector.load %arg6[%c0_14, %c0_15] : memref<16x96xbf16, #tpu.memory_space<vmem>>, vector<16x96xbf16>
      tpu.vector_store %arg6[%c0_14, %c0_15], %16 {strides = array<i32>} : memref<16x96xbf16, #tpu.memory_space<vmem>>, vector<16x96xbf16>,
    } else {
    }
    return
  }
  func.func @transform_0(%arg0: i32, %arg1: i32, %arg2: i32) -> (i32, i32) {
    %c0_i32 = arith.constant 0 : i32
    return %arg0, %arg2 : i32, i32
  }
  func.func @transform_1(%arg0: i32, %arg1: i32, %arg2: i32) -> (i32, i32) {
    %c0_i32 = arith.constant 0 : i32
    return %arg2, %arg1 : i32, i32
  }
  func.func @transform_2(%arg0: i32, %arg1: i32, %arg2: i32) -> (i32, i32) {
    %c0_i32 = arith.constant 0 : i32
    %c0_i32_0 = arith.constant 0 : i32
    return %c0_i32, %arg1 : i32, i32
  }
  func.func @transform_3(%arg0: i32, %arg1: i32, %arg2: i32) -> (i32, i32) {
    %c0_i32 = arith.constant 0 : i32
    return %arg0, %arg1 : i32, i32
  }
}

</mosaic_0001>

<bundles_post_ra>
// kernel: tpu_custom_call.1
= control target key start
LH: loop header
LB: loop body
LE: loop exit
PB: predicated region body
PF: predicated region fallthrough
CT: control target
= control target key end

     0   :  { %8 = vsyncpa [#allocation4], 0  ;;  %s317_s0 = inlined_call_operand.hbm [shape: bf16[16,32], index: 0, kind: input, shape index: {}]   ;;  %s318_s1 = inlined_call_operand.hbm [shape: bf16[32,96], index: 1, kind: input, shape index: {}]   ;;  %s319_s2 = inlined_call_operand.vmem [shape: f32[1,96], index: 2, kind: input, shape index: {}]   ;;  %s320_s3 = inlined_call_operand.hbm [shape: bf16[16,96], index: 3, kind: output, shape index: {}]  }
   0x1   :  { %9 = vsyncpa [#allocation7], 0 }
   0x2   :  { %10 = vsyncpa [#allocation5], 0  ;;  %s265_s12 = smov [#allocation3]  }
   0x3   :  { %s16_s13 = sshll.u32 %s265_s12, 4  ;;  %s17_s13 = int_to_ptr.vmem [resolvable:$true] %s16_s13 }
   0x4   :  { %s207_s14 = scalar_lea.vmem %s17_s13, 128  ;;  %p212_p1 = scmp.lt.s32.totalorder %s17_s13, %s17_s13 }
   0x5   :  { %p208_p0 = scmp.ne.s32.totalorder %s17_s13, %s207_s14  ;;  %p213_p2 = scmp.lt.s32.totalorder %s207_s14, %s207_s14 }
   0x7   :  { %p214_p3 = por %p213_p2, %p212_p1 }
   0x9   :  { %p215_p4 = pnand %p214_p3, %p208_p0 }
   0xb   :  { %218 = shalt.err (!%p215_p4)
}
   0xc   :  { %s266_s15 = smov 64   ;;  %s267_s16 = smov 4  }
   0xd   :  { %22 = dma.hbm_to_vmem [thread:$0]  %s317_s0, 128, %s17_s13, [#allocation4], %s266_s15, %s266_s15, %s267_s16  }
   0xe   :  { %s268_s19 = smov [#allocation6]  }
   0xf   :  { %s28_s20 = sshll.u32 %s268_s19, 4  ;;  %s29_s20 = int_to_ptr.vmem [resolvable:$true] %s28_s20 }
  0x10   :  { %s227_s21 = scalar_lea.vmem %s29_s20, 256  ;;  %p232_p6 = scmp.lt.s32.totalorder %s29_s20, %s29_s20 }
  0x11   :  { %p228_p5 = scmp.ne.s32.totalorder %s29_s20, %s227_s21  ;;  %p233_p7 = scmp.lt.s32.totalorder %s227_s21, %s227_s21 }
  0x13   :  { %p234_p8 = por %p233_p7, %p232_p6 }
  0x15   :  { %p235_p9 = pnand %p234_p8, %p228_p5 }
  0x17   :  { %238 = shalt.err (!%p235_p9)
}
  0x18   :  { %34 = dma.hbm_to_vmem [thread:$0]  %s318_s1, 256, %s29_s20, [#allocation7], %s266_s15, %s266_s15, %s267_s16  }
  0x19   :  { %259 = dma.done.wait [#allocation4], 128  }
  0x1a   :  { %260 = vsyncadd [#allocation4], 4294967168 }
  0x1b   :  { %261 = dma.done.wait [#allocation7], 256  }
  0x1c   :  { %262 = vsyncadd [#allocation7], 4294967040  ;;  %vm48_vm0 = vcmask 785408   ;;  %v269_v0 = vmov 0.0   ;;  %vm270_vm1 = vmmov 0   ;;  %v196_v1 = vld [vmem:[#allocation6 + $0x8] sm:$0xff]  }
  0x1d   :  { %49 = vst.msk [vmem:[#allocation2] sm:$0xff] %vm48_vm0, %v269_v0  ;;  %50 = vst.msk [vmem:[#allocation2 + $0x8] sm:$0xff] %vm48_vm0, %v269_v0  ;;  %181 = vmatprep.subr.bf16.mxu0 %v269_v0  ;;  %185 = vmatprep.mubr.msk.bf16.mxu0 %vm270_vm1, %v269_v0  ;;  %v197_v2 = vld [vmem:[#allocation6] sm:$0xff]   ;;  %v198_v3 = vld [vmem:[#allocation3] sm:$0xff]   ;;  %vm76_vm2 = vcmask 261120   ;;  %vm148_vm3 = vcmask 781312  }
  0x1e   :  { %182 = vmatpush3.bf16.msra.mxu0 %v196_v1  ;;  %v173_v12 = vld [vmem:[%s319_s2] ss:$0 sm:$0xff]  ;;  %s271_s24 = smov [#allocation8]  }
  0x1f   :  { %183 = vmatprep.subr.bf16.mxu0 %v269_v0  ;;  %s156_s25 = sshll.u32 %s271_s24, 4  ;;  %s157_s25 = int_to_ptr.vmem [resolvable:$true] %s156_s25 }
  0x20   :  { %s239_s26 = scalar_lea.vmem %s157_s25, 128  ;;  %p244_p11 = scmp.lt.s32.totalorder %s157_s25, %s157_s25 }
  0x21   :  { %p240_p10 = scmp.ne.s32.totalorder %s157_s25, %s239_s26  ;;  %p245_p12 = scmp.lt.s32.totalorder %s239_s26, %s239_s26 }
  0x22   :  { %184 = vmatpush3.bf16.msra.mxu0 %v197_v2 }
  0x23   :  { %p246_p13 = por %p245_p12, %p244_p11 }
  0x24   :  { %v51_v4 = vld [vmem:[#allocation2] sm:$0xff]  ;;  %v52_v8 = vld [vmem:[#allocation2 + $0x8] sm:$0xff] }
  0x25   :  { %186 = vmatmul.mubr.msk.bf16.vlgmr.msra.gmra.mxu0 %vm76_vm2, %v198_v3  ;;  %p247_p0 = pnand %p246_p13, %p240_p10 }
  0xe5   :  { %v114_v5 = vpop.f32.mrf.mxu0 }
  0xe6   :  { %v121_v6 = vadd.f32 %v114_v5, %v51_v4 }
  0xe7   :  { %v187_v7 = vpop.f32.mrf.mxu0 }
  0xe8   :  { %124 = vst.msk [vmem:[#allocation2] sm:$0xff] %vm48_vm0, %v121_v6 }
  0xe9   :  { %v117_v9 = vpop.f32.mrf.mxu0 }
  0xea   :  { %v122_v10 = vadd.f32 %v117_v9, %v52_v8 }
  0xeb   :  { %v188_v11 = vpop.f32.mrf.mxu0 }
  0xec   :  { %125 = vst.msk [vmem:[#allocation2 + $0x8] sm:$0xff] %vm48_vm0, %v122_v10 }
  0xef   :  { %v129_v13 = vld [vmem:[#allocation2] sm:$0xff] }
  0xf0   :  { %v138_v14 = vadd.f32 %v173_v12, %v129_v13 }
  0xf2   :  { %v176_v15 = vpack.c.bf16 %v138_v14, %v138_v14 }
  0xf3   :  { %v130_v16 = vld [vmem:[#allocation2 + $0x8] sm:$0xff] }
  0xf4   :  { %v139_v17 = vadd.f32 %v173_v12, %v130_v16  ;;  %149 = vst.msk [vmem:[#allocation8] sm:$0xf] %vm148_vm3, %v176_v15 }
  0xf6   :  { %v177_v18 = vpack.c.bf16 %v139_v17, %v139_v17 }
  0xf8   :  { %150 = vst.msk [vmem:[#allocation8 + $0x4] sm:$0xf] %vm148_vm3, %v177_v18 }
  0xf9   :  { %250 = shalt.err (!%p247_p0)
}
  0xfa   :  { %162 = dma.vmem_to_hbm [thread:$0]  %s157_s25, 128, %s320_s3, [#allocation5], %s266_s15, %s266_s15, %s267_s16  }
  0xfb   :  { %263 = dma.done.wait [#allocation5], 128  }
  0xfc   :  { %264 = vsyncadd [#allocation5], 4294967168 }
  0xfd   :  { %166 = vsyncpa [#allocation4], 1 }
  0xfe   :  { %167 = vsyncpa [#allocation7], 1 }
  0xff   :  { %168 = vsyncpa [#allocation5], 1 }

</bundles_post_ra>
